<compile_context>
chip_gen: v7x
topology: tpu7x:2x2x1
jax: 0.10.0
libtpu: 0.0.40
codegen_flags: <defaults>
</compile_context>

<pallas_src>
import functools
import math

import jax
import jax.numpy as jnp
from jax import lax
from jax.experimental import pallas as pl
from jax.experimental.pallas import tpu as pltpu


def _round_up(x, m):
    return ((x + m - 1) // m) * m


def _cdiv(a, b):
    return -(-a // b)


def _tpu_generation():
    try:
        kind = jax.devices()[0].device_kind.lower()
    except Exception:
        return "unknown"
    if "v7" in kind or "7x" in kind:
        return "v7"
    if "v6" in kind:
        return "v6"
    if "v5e" in kind or "v5 lite" in kind or "v5lite" in kind:
        return "v5e"
    if "v5" in kind:
        return "v5p"
    return "unknown"


def _select_tiles(B, S, d_pad, gen, tb_max, ts_max):
    """Generation-aware (tb, ts, chunk) selection under a VMEM budget."""
    if gen == "v7":
        budget, limit_cap = 44 << 20, 56 << 20      # 64 MiB physical VMEM
    elif gen in ("v5e", "v6"):
        budget, limit_cap = 96 << 20, 110 << 20     # 128 MiB physical VMEM
    else:
        budget, limit_cap = 44 << 20, 64 << 20      # conservative default

    tb = min(_round_up(B, 8), max(8, tb_max))
    if gen == "v7":
        # 2 TensorCores per chip: want >= 2 batch tiles when B allows it.
        while tb > 8 and _cdiv(B, tb) < 2:
            tb = max(8, _round_up(tb // 2, 8))

    # Lane-dense scores: ts a multiple of 128 once S >= 128, else round_up(S, 8).
    gran = 128 if S >= 128 else _round_up(S, 8)
    cs = gran                                        # inner S chunk (bounded temps)

    fixed = (3 * d_pad * d_pad * 2 * 2               # 3 resident bf16 weights, 2 bufs
             + 2 * 2 * tb * d_pad * 4                # lat / out tiles (double buffered)
             + 2 * tb * d_pad * 4                    # q / acc scratch
             + 3 * tb * cs * d_pad * 4)              # chunk-temporary headroom
    per_key = 2 * tb * d_pad * 2                     # emb bf16, double buffered, per key
    ts_fit = max(gran, (max(0, budget - fixed) // per_key) // gran * gran)
    ts_cap = max(gran, (max(8, ts_max) // gran) * gran)
    ts = max(gran, min(_round_up(S, gran), ts_cap, ts_fit))
    return tb, ts, cs, limit_cap


def prior_kernel(lat_ref, emb_ref, wqk_ref, wvo_ref, wo_ref, out_ref,
                 q_scr, m_scr, l_scr, acc_scr, *,
                 seq_len, cs, pad_s, use_bf16_vpu):
    # lat_ref : (TB, D)     f32      emb_ref : (TB, TS, D) bf16
    # wqk_ref : (D, D) bf16  = Wq @ Wk^T / sqrt(D)   (folded wrapper-side)
    # wvo_ref : (D, D) bf16  = Wv @ Wo               (folded wrapper-side)
    # wo_ref  : (D, D) bf16
    # scratch : q/acc (TB, D) f32, m/l (TB, 1) f32
    s = pl.program_id(1)
    ns = pl.num_programs(1)

    @pl.when(s == 0)
    def _init():
        # Effective query: one small MXU matmul per batch tile.  The per-key
        # K/V projections are hoisted out of the S loop entirely.
        q_scr[...] = jnp.dot(lat_ref[...].astype(jnp.bfloat16), wqk_ref[...],
                             preferred_element_type=jnp.float32)
        m_scr[...] = jnp.full(m_scr.shape, -jnp.inf, dtype=m_scr.dtype)
        l_scr[...] = jnp.zeros(l_scr.shape, dtype=l_scr.dtype)
        acc_scr[...] = jnp.zeros(acc_scr.shape, dtype=acc_scr.dtype)

    tb, tile_s, d = emb_ref.shape
    n_chunks = tile_s // cs

    q_f32 = q_scr[...]
    q_bf = q_f32.astype(jnp.bfloat16)

    # Static (unrolled) chunking over the S tile: every (TB, CS, D) temporary
    # stays bounded; slices are static views (no copies).
    for c in range(n_chunks):
        e = emb_ref[:, c * cs:(c + 1) * cs, :]                   # (TB, CS, D) bf16
        if use_bf16_vpu:                                         # v6e / v7x: bf16 VALU
            scores = jnp.sum(q_bf[:, None, :] * e, axis=-1,
                             dtype=jnp.float32)                  # (TB, CS) f32
        else:                                                    # v5e: f32 VPU math
            scores = jnp.sum(q_f32[:, None, :] * e.astype(jnp.float32), axis=-1)

        valid = None
        if pad_s:
            key_idx = (s * tile_s + c * cs
                       + lax.broadcasted_iota(jnp.int32, scores.shape, 1))
            valid = key_idx < seq_len
            scores = jnp.where(valid, scores, -1e30)

        # Online (flash-style) softmax accumulation.
        m_prev = m_scr[...]
        m_new = jnp.maximum(m_prev, jnp.max(scores, axis=-1, keepdims=True))
        alpha = jnp.exp(m_prev - m_new)                          # (TB, 1)
        p = jnp.exp(scores - m_new)                              # (TB, CS)
        if pad_s:
            p = jnp.where(valid, p, 0.0)                         # robust even if a chunk is fully padded
        l_scr[...] = alpha * l_scr[...] + jnp.sum(p, axis=-1, keepdims=True)
        if use_bf16_vpu:
            contrib = jnp.sum(p.astype(jnp.bfloat16)[:, :, None] * e, axis=1,
                              dtype=jnp.float32)                 # (TB, D) f32
        else:
            contrib = jnp.sum(p[:, :, None] * e.astype(jnp.float32), axis=1)
        acc_scr[...] = alpha * acc_scr[...] + contrib
        m_scr[...] = m_new

    @pl.when(s == ns - 1)
    def _finalize():
        # out = lat @ Wo + (softmax . emb) @ (Wv Wo); exact divide (runs once).
        ctx = acc_scr[...] / l_scr[...]
        out = jnp.dot(lat_ref[...].astype(jnp.bfloat16), wo_ref[...],
                      preferred_element_type=jnp.float32)
        out = out + jnp.dot(ctx.astype(jnp.bfloat16), wvo_ref[...],
                            preferred_element_type=jnp.float32)
        out_ref[...] = out.astype(out_ref.dtype)


def zoo_forward(latents, preferred_embeds, wq, wk, wv, wo, *,
                tb_max=128, ts_max=512, out_dtype=jnp.float32):
    """Pallas TPU forward of the stand-in prior.  latents (B, D), embeds (B, S, D)."""
    B, D = latents.shape
    _, S, _ = preferred_embeds.shape
    f32, bf16 = jnp.float32, jnp.bfloat16

    gen = _tpu_generation()
    use_bf16_vpu = gen in ("v6", "v7")        # v5e has no bf16 VALU/EUP

    d_pad = _round_up(D, 128)
    tb, ts, cs, limit_cap = _select_tiles(B, S, d_pad, gen, tb_max, ts_max)
    b_pad = _round_up(B, tb)
    s_pad = _round_up(S, ts)

    # Fold the attention scale and the K / V / O projections wrapper-side:
    # only 3 DxD bf16 matrices ship to the kernel.
    wq32, wk32, wv32, wo32 = (w.astype(f32) for w in (wq, wk, wv, wo))
    wqk = (wq32 @ wk32.T) * (1.0 / math.sqrt(D))
    wvo = wv32 @ wo32

    def pad_w(w):
        if d_pad != D:
            w = jnp.pad(w, ((0, d_pad - D), (0, d_pad - D)))
        return w.astype(bf16)

    wqk_p, wvo_p, wo_p = pad_w(wqk), pad_w(wvo), pad_w(wo32)

    lat_p = latents.astype(f32)
    if (b_pad, d_pad) != (B, D):
        lat_p = jnp.pad(lat_p, ((0, b_pad - B), (0, d_pad - D)))

    emb_p = preferred_embeds.astype(bf16)     # cast BEFORE padding (halves the HBM copy)
    if (b_pad, s_pad, d_pad) != (B, S, D):
        emb_p = jnp.pad(emb_p, ((0, b_pad - B), (0, s_pad - S), (0, d_pad - D)))

    grid = (b_pad // tb, s_pad // ts)
    kernel = functools.partial(prior_kernel, seq_len=S, cs=cs,
                               pad_s=(s_pad != S), use_bf16_vpu=use_bf16_vpu)

    # Scoped VMEM request derived from the actual tiles / scratch (+headroom),
    # capped per generation (v7x 64 MiB physical, v5e/v6e 128 MiB).
    out_bytes = jnp.dtype(out_dtype).itemsize
    vmem_est = (3 * d_pad * d_pad * 2 * 2          # resident bf16 weights, 2 bufs each
                + 2 * tb * ts * d_pad * 2          # emb bf16 tile, double buffered
                + 2 * tb * d_pad * 4               # lat tile, double buffered
                + 2 * tb * d_pad * out_bytes       # out tile, double buffered
                + 2 * tb * d_pad * 4 + 4 * tb * 4  # q/acc + m/l scratch
                + 3 * tb * cs * d_pad * 4)         # chunk-temporary headroom
    vmem_limit = int(min(limit_cap, max(16 << 20, int(1.3 * vmem_est))))

    out_p = pl.pallas_call(
        kernel,
        out_shape=jax.ShapeDtypeStruct((b_pad, d_pad), out_dtype),
        grid_spec=pltpu.PrefetchScalarGridSpec(
            num_scalar_prefetch=0,
            grid=grid,
            in_specs=[
                pl.BlockSpec((tb, d_pad), lambda b, s: (b, 0)),          # latents
                pl.BlockSpec((tb, ts, d_pad), lambda b, s: (b, s, 0)),   # embeds (bf16)
                # TODO(synk): single-buffer these grid-invariant weights
                # (pipeline_mode=pl.Buffered(1)) once that path is guaranteed
                # on all generations; double-buffered 3*D^2 bf16 is already small.
                pl.BlockSpec((d_pad, d_pad), lambda b, s: (0, 0)),       # Wq Wk^T / sqrt(D)
                pl.BlockSpec((d_pad, d_pad), lambda b, s: (0, 0)),       # Wv Wo
                pl.BlockSpec((d_pad, d_pad), lambda b, s: (0, 0)),       # Wo
            ],
            out_specs=pl.BlockSpec((tb, d_pad), lambda b, s: (b, 0)),
            scratch_shapes=[
                pltpu.VMEM((tb, d_pad), jnp.float32),   # q_eff
                pltpu.VMEM((tb, 1), jnp.float32),       # m (online softmax max)
                pltpu.VMEM((tb, 1), jnp.float32),       # l (online softmax denom)
                pltpu.VMEM((tb, d_pad), jnp.float32),   # acc (p-weighted emb sum)
            ],
        ),
        compiler_params=pltpu.CompilerParams(
            dimension_semantics=("parallel", "arbitrary"),
            vmem_limit_bytes=vmem_limit,
        ),
    )(lat_p, emb_p, wqk_p, wvo_p, wo_p)

    return out_p[:B, :D]


def zoo_forward_ref(latents, preferred_embeds, wq, wk, wv, wo):
    # Pure-JAX f32 reference for correctness checking.
    d = latents.shape[-1]
    q = latents @ wq
    k = jnp.einsum('bsd,de->bse', preferred_embeds, wk)
    v = jnp.einsum('bsd,de->bse', preferred_embeds, wv)
    scores = jnp.einsum('bd,bsd->bs', q, k) / jnp.sqrt(jnp.float32(d))
    p = jax.nn.softmax(scores, axis=-1)
    ctx = jnp.einsum('bs,bsd->bd', p, v)
    return (latents + ctx) @ wo


if __name__ == "__main__":
    B, S, D = 2, 8, 32   # batch, number of preferred-embed tokens, embed dim

    key = jax.random.PRNGKey(0)
    k_lat, k_emb, k_wq, k_wk, k_wv, k_wo = jax.random.split(key, 6)

    latents = jax.random.normal(k_lat, (B, D), dtype=jnp.float32)
    preferred_embeds = jax.random.normal(k_emb, (B, S, D), dtype=jnp.float32)

    init = 1.0 / jnp.sqrt(jnp.float32(D))
    wq = jax.random.normal(k_wq, (D, D), dtype=jnp.float32) * init
    wk = jax.random.normal(k_wk, (D, D), dtype=jnp.float32) * init
    wv = jax.random.normal(k_wv, (D, D), dtype=jnp.float32) * init
    wo = jax.random.normal(k_wo, (D, D), dtype=jnp.float32) * init

    out = zoo_forward(latents, preferred_embeds, wq, wk, wv, wo)
    out = jax.block_until_ready(out)

    ref = zoo_forward_ref(latents, preferred_embeds, wq, wk, wv, wo)
    assert out.shape == (B, D)
    # bf16 MXU/VPU operands with f32 accumulation -> loosened tolerance vs f32 ref.
    assert jnp.allclose(out, ref, atol=8e-2, rtol=8e-2), \
        float(jnp.max(jnp.abs(out - ref)))

    print("KERNEL_OK")
</pallas_src>

<mosaic_0001>
module attributes {stable_mosaic.version = 11 : i64} {
  func.func @prior_kernel(%arg0: i32, %arg1: i32, %arg2: memref<8x128xf32, #tpu.memory_space<vmem>>, %arg3: memref<8x8x128xbf16, #tpu.memory_space<vmem>>, %arg4: memref<128x128xbf16, #tpu.memory_space<vmem>>, %arg5: memref<128x128xbf16, #tpu.memory_space<vmem>>, %arg6: memref<128x128xbf16, #tpu.memory_space<vmem>>, %arg7: memref<8x128xf32, #tpu.memory_space<vmem>>, %arg8: memref<8x128xf32, #tpu.memory_space<vmem>>, %arg9: memref<8x1xf32, #tpu.memory_space<vmem>>, %arg10: memref<8x1xf32, #tpu.memory_space<vmem>>, %arg11: memref<8x128xf32, #tpu.memory_space<vmem>>) attributes {dimension_semantics = [#tpu.dimension_semantics<parallel>, #tpu.dimension_semantics<arbitrary>], iteration_bounds = array<i64: 1, 1>, scalar_prefetch = 0 : i64, scratch_operands = 4 : i64, tpu.core_type = #tpu.core_type<tc>, window_params = [{transform_indices = @transform_0, window_bounds = array<i64: 8, 128>}, {transform_indices = @transform_1, window_bounds = array<i64: 8, 8, 128>}, {pipeline_mode = #tpu.pipeline_mode<synchronous>, transform_indices = @transform_2, window_bounds = array<i64: 128, 128>}, {pipeline_mode = #tpu.pipeline_mode<synchronous>, transform_indices = @transform_3, window_bounds = array<i64: 128, 128>}, {pipeline_mode = #tpu.pipeline_mode<synchronous>, transform_indices = @transform_4, window_bounds = array<i64: 128, 128>}, {transform_indices = @transform_5, window_bounds = array<i64: 8, 128>}]} {
    %c0_i32 = arith.constant 0 : i32
    %0 = arith.cmpi eq, %arg1, %c0_i32 : i32
    %1 = arith.extui %0 : i1 to i32
    %c0_i32_0 = arith.constant 0 : i32
    %2 = arith.cmpi ne, %1, %c0_i32_0 : i32
    scf.if %2 {
      %c0_22 = arith.constant 0 : index
      %c0_23 = arith.constant 0 : index
      %39 = vector.load %arg2[%c0_22, %c0_23] : memref<8x128xf32, #tpu.memory_space<vmem>>, vector<8x128xf32>
      %40 = arith.truncf %39 : vector<8x128xf32> to vector<8x128xbf16>
      %c0_24 = arith.constant 0 : index
      %c0_25 = arith.constant 0 : index
      %41 = vector.load %arg4[%c0_24, %c0_25] : memref<128x128xbf16, #tpu.memory_space<vmem>>, vector<128x128xbf16>
      %cst_26 = arith.constant dense<0.000000e+00> : vector<8x128xf32>
      %42 = tpu.matmul %40, %41, %cst_26 {dimension_numbers = #tpu.dot_dimension_numbers<[1], [0], [0], [1], [0, 0, 1, 1], [], []>} : vector<8x128xbf16>, vector<128x128xbf16>, vector<8x128xf32> -> vector<8x128xf32>
      %c0_27 = arith.constant 0 : index
      %c0_28 = arith.constant 0 : index
      %43 = vector.load %arg8[%c0_27, %c0_28] : memref<8x128xf32, #tpu.memory_space<vmem>>, vector<8x128xf32>
      tpu.vector_store %arg8[%c0_27, %c0_28], %42 {strides = array<i32>} : memref<8x128xf32, #tpu.memory_space<vmem>>, vector<8x128xf32>,
      %cst_29 = arith.constant 0xFF800000 : f32
      %44 = vector.broadcast %cst_29 : f32 to vector<8x1xf32>
      %c0_30 = arith.constant 0 : index
      %c0_31 = arith.constant 0 : index
      %45 = vector.load %arg9[%c0_30, %c0_31] : memref<8x1xf32, #tpu.memory_space<vmem>>, vector<8x1xf32>
      tpu.vector_store %arg9[%c0_30, %c0_31], %44 {strides = array<i32>} : memref<8x1xf32, #tpu.memory_space<vmem>>, vector<8x1xf32>,
      %cst_32 = arith.constant 0.000000e+00 : f32
      %46 = vector.broadcast %cst_32 : f32 to vector<8x1xf32>
      %c0_33 = arith.constant 0 : index
      %c0_34 = arith.constant 0 : index
      %47 = vector.load %arg10[%c0_33, %c0_34] : memref<8x1xf32, #tpu.memory_space<vmem>>, vector<8x1xf32>
      tpu.vector_store %arg10[%c0_33, %c0_34], %46 {strides = array<i32>} : memref<8x1xf32, #tpu.memory_space<vmem>>, vector<8x1xf32>,
      %cst_35 = arith.constant 0.000000e+00 : f32
      %48 = vector.broadcast %cst_35 : f32 to vector<8x128xf32>
      %c0_36 = arith.constant 0 : index
      %c0_37 = arith.constant 0 : index
      %49 = vector.load %arg11[%c0_36, %c0_37] : memref<8x128xf32, #tpu.memory_space<vmem>>, vector<8x128xf32>
      tpu.vector_store %arg11[%c0_36, %c0_37], %48 {strides = array<i32>} : memref<8x128xf32, #tpu.memory_space<vmem>>, vector<8x128xf32>,
    } else {
    }
    %c0 = arith.constant 0 : index
    %c0_1 = arith.constant 0 : index
    %3 = vector.load %arg8[%c0, %c0_1] : memref<8x128xf32, #tpu.memory_space<vmem>>, vector<8x128xf32>
    %c0_2 = arith.constant 0 : index
    %c0_3 = arith.constant 0 : index
    %c0_4 = arith.constant 0 : index
    %4 = vector.load %arg3[%c0_2, %c0_3, %c0_4] : memref<8x8x128xbf16, #tpu.memory_space<vmem>>, vector<8x8x128xbf16>
    %5 = vector.shape_cast %3 : vector<8x128xf32> to vector<8x1x128xf32>
    %6 = arith.extf %4 : vector<8x8x128xbf16> to vector<8x8x128xf32>
    %7 = vector.broadcast %5 : vector<8x1x128xf32> to vector<8x8x128xf32>
    %8 = arith.mulf %7, %6 : vector<8x8x128xf32>
    %cst = arith.constant dense<0.000000e+00> : vector<8x8xf32>
    %9 = vector.multi_reduction <add>, %8, %cst [2] : vector<8x8x128xf32> to vector<8x8xf32>
    %c0_5 = arith.constant 0 : index
    %c0_6 = arith.constant 0 : index
    %10 = vector.load %arg9[%c0_5, %c0_6] : memref<8x1xf32, #tpu.memory_space<vmem>>, vector<8x1xf32>
    %cst_7 = arith.constant dense<0xFF800000> : vector<8xf32>
    %11 = vector.multi_reduction <maximumf>, %9, %cst_7 [1] : vector<8x8xf32> to vector<8xf32>
    %12 = vector.shape_cast %11 : vector<8xf32> to vector<8x1xf32>
    %13 = arith.maximumf %10, %12 : vector<8x1xf32>
    %14 = arith.subf %10, %13 : vector<8x1xf32>
    %15 = math.exp %14 : vector<8x1xf32>
    %16 = vector.broadcast %13 : vector<8x1xf32> to vector<8x8xf32>
    %17 = arith.subf %9, %16 : vector<8x8xf32>
    %18 = math.exp %17 : vector<8x8xf32>
    %c0_8 = arith.constant 0 : index
    %c0_9 = arith.constant 0 : index
    %19 = vector.load %arg10[%c0_8, %c0_9] : memref<8x1xf32, #tpu.memory_space<vmem>>, vector<8x1xf32>
    %20 = arith.mulf %15, %19 : vector<8x1xf32>
    %cst_10 = arith.constant dense<0.000000e+00> : vector<8xf32>
    %21 = vector.multi_reduction <add>, %18, %cst_10 [1] : vector<8x8xf32> to vector<8xf32>
    %22 = vector.shape_cast %21 : vector<8xf32> to vector<8x1xf32>
    %23 = arith.addf %20, %22 : vector<8x1xf32>
    %c0_11 = arith.constant 0 : index
    %c0_12 = arith.constant 0 : index
    %24 = vector.load %arg10[%c0_11, %c0_12] : memref<8x1xf32, #tpu.memory_space<vmem>>, vector<8x1xf32>
    tpu.vector_store %arg10[%c0_11, %c0_12], %23 {strides = array<i32>} : memref<8x1xf32, #tpu.memory_space<vmem>>, vector<8x1xf32>,
    %25 = vector.shape_cast %18 : vector<8x8xf32> to vector<8x8x1xf32>
    %26 = arith.extf %4 : vector<8x8x128xbf16> to vector<8x8x128xf32>
    %27 = vector.broadcast %25 : vector<8x8x1xf32> to vector<8x8x128xf32>
    %28 = arith.mulf %27, %26 : vector<8x8x128xf32>
    %cst_13 = arith.constant dense<0.000000e+00> : vector<8x128xf32>
    %29 = vector.multi_reduction <add>, %28, %cst_13 [1] : vector<8x8x128xf32> to vector<8x128xf32>
    %c0_14 = arith.constant 0 : index
    %c0_15 = arith.constant 0 : index
    %30 = vector.load %arg11[%c0_14, %c0_15] : memref<8x128xf32, #tpu.memory_space<vmem>>, vector<8x128xf32>
    %31 = vector.broadcast %15 : vector<8x1xf32> to vector<8x128xf32>
    %32 = arith.mulf %31, %30 : vector<8x128xf32>
    %33 = arith.addf %32, %29 : vector<8x128xf32>
    %c0_16 = arith.constant 0 : index
    %c0_17 = arith.constant 0 : index
    %34 = vector.load %arg11[%c0_16, %c0_17] : memref<8x128xf32, #tpu.memory_space<vmem>>, vector<8x128xf32>
    tpu.vector_store %arg11[%c0_16, %c0_17], %33 {strides = array<i32>} : memref<8x128xf32, #tpu.memory_space<vmem>>, vector<8x128xf32>,
    %c0_18 = arith.constant 0 : index
    %c0_19 = arith.constant 0 : index
    %35 = vector.load %arg9[%c0_18, %c0_19] : memref<8x1xf32, #tpu.memory_space<vmem>>, vector<8x1xf32>
    tpu.vector_store %arg9[%c0_18, %c0_19], %13 {strides = array<i32>} : memref<8x1xf32, #tpu.memory_space<vmem>>, vector<8x1xf32>,
    %c0_i32_20 = arith.constant 0 : i32
    %36 = arith.cmpi eq, %arg1, %c0_i32_20 : i32
    %37 = arith.extui %36 : i1 to i32
    %c0_i32_21 = arith.constant 0 : i32
    %38 = arith.cmpi ne, %37, %c0_i32_21 : i32
    scf.if %38 {
      %c0_22 = arith.constant 0 : index
      %c0_23 = arith.constant 0 : index
      %39 = vector.load %arg11[%c0_22, %c0_23] : memref<8x128xf32, #tpu.memory_space<vmem>>, vector<8x128xf32>
      %c0_24 = arith.constant 0 : index
      %c0_25 = arith.constant 0 : index
      %40 = vector.load %arg10[%c0_24, %c0_25] : memref<8x1xf32, #tpu.memory_space<vmem>>, vector<8x1xf32>
      %41 = vector.broadcast %40 : vector<8x1xf32> to vector<8x128xf32>
      %42 = arith.divf %39, %41 : vector<8x128xf32>
      %c0_26 = arith.constant 0 : index
      %c0_27 = arith.constant 0 : index
      %43 = vector.load %arg2[%c0_26, %c0_27] : memref<8x128xf32, #tpu.memory_space<vmem>>, vector<8x128xf32>
      %44 = arith.truncf %43 : vector<8x128xf32> to vector<8x128xbf16>
      %c0_28 = arith.constant 0 : index
      %c0_29 = arith.constant 0 : index
      %45 = vector.load %arg6[%c0_28, %c0_29] : memref<128x128xbf16, #tpu.memory_space<vmem>>, vector<128x128xbf16>
      %cst_30 = arith.constant dense<0.000000e+00> : vector<8x128xf32>
      %46 = tpu.matmul %44, %45, %cst_30 {dimension_numbers = #tpu.dot_dimension_numbers<[1], [0], [0], [1], [0, 0, 1, 1], [], []>} : vector<8x128xbf16>, vector<128x128xbf16>, vector<8x128xf32> -> vector<8x128xf32>
      %47 = arith.truncf %42 : vector<8x128xf32> to vector<8x128xbf16>
      %c0_31 = arith.constant 0 : index
      %c0_32 = arith.constant 0 : index
      %48 = vector.load %arg5[%c0_31, %c0_32] : memref<128x128xbf16, #tpu.memory_space<vmem>>, vector<128x128xbf16>
      %cst_33 = arith.constant dense<0.000000e+00> : vector<8x128xf32>
      %49 = tpu.matmul %47, %48, %cst_33 {dimension_numbers = #tpu.dot_dimension_numbers<[1], [0], [0], [1], [0, 0, 1, 1], [], []>} : vector<8x128xbf16>, vector<128x128xbf16>, vector<8x128xf32> -> vector<8x128xf32>
      %50 = arith.addf %46, %49 : vector<8x128xf32>
      %c0_34 = arith.constant 0 : index
      %c0_35 = arith.constant 0 : index
      %51 = vector.load %arg7[%c0_34, %c0_35] : memref<8x128xf32, #tpu.memory_space<vmem>>, vector<8x128xf32>
      tpu.vector_store %arg7[%c0_34, %c0_35], %50 {strides = array<i32>} : memref<8x128xf32, #tpu.memory_space<vmem>>, vector<8x128xf32>,
    } else {
    }
    return
  }
  func.func @transform_0(%arg0: i32, %arg1: i32) -> (i32, i32) {
    %c0_i32 = arith.constant 0 : i32
    %c0_i32_0 = arith.constant 0 : i32
    return %arg0, %c0_i32 : i32, i32
  }
  func.func @transform_1(%arg0: i32, %arg1: i32) -> (i32, i32, i32) {
    %c0_i32 = arith.constant 0 : i32
    %c0_i32_0 = arith.constant 0 : i32
    return %arg0, %arg1, %c0_i32 : i32, i32, i32
  }
  func.func @transform_2(%arg0: i32, %arg1: i32) -> (i32, i32) {
    %c0_i32 = arith.constant 0 : i32
    %c0_i32_0 = arith.constant 0 : i32
    %c0_i32_1 = arith.constant 0 : i32
    return %c0_i32, %c0_i32_0 : i32, i32
  }
  func.func @transform_3(%arg0: i32, %arg1: i32) -> (i32, i32) {
    %c0_i32 = arith.constant 0 : i32
    %c0_i32_0 = arith.constant 0 : i32
    %c0_i32_1 = arith.constant 0 : i32
    return %c0_i32, %c0_i32_0 : i32, i32
  }
  func.func @transform_4(%arg0: i32, %arg1: i32) -> (i32, i32) {
    %c0_i32 = arith.constant 0 : i32
    %c0_i32_0 = arith.constant 0 : i32
    %c0_i32_1 = arith.constant 0 : i32
    return %c0_i32, %c0_i32_0 : i32, i32
  }
  func.func @transform_5(%arg0: i32, %arg1: i32) -> (i32, i32) {
    %c0_i32 = arith.constant 0 : i32
    %c0_i32_0 = arith.constant 0 : i32
    return %arg0, %c0_i32 : i32, i32
  }
}

</mosaic_0001>

<bundles_post_ra>
// kernel: tpu_custom_call.1
= control target key start
LH: loop header
LB: loop body
LE: loop exit
PB: predicated region body
PF: predicated region fallthrough
CT: control target
= control target key end

     0   :  { %10 = vsyncpa [#allocation7], 0  ;;  %s1510_s0 = inlined_call_operand.hbm [shape: f32[8,128], index: 0, kind: input, shape index: {}]   ;;  %s1511_s1 = inlined_call_operand.hbm [shape: bf16[8,8,128], index: 1, kind: input, shape index: {}]   ;;  %s1512_s2 = inlined_call_operand.hbm [shape: bf16[128,128], index: 2, kind: input, shape index: {}]   ;;  %s1513_s3 = inlined_call_operand.hbm [shape: bf16[128,128], index: 3, kind: input, shape index: {}]   ;;  %s1514_s4 = inlined_call_operand.hbm [shape: bf16[128,128], index: 4, kind: input, shape index: {}]   ;;  %s1515_s5 = inlined_call_operand.hbm [shape: f32[8,128], index: 5, kind: output, shape index: {}]  }
   0x1   :  { %11 = vsyncpa [#allocation10], 0 }
   0x2   :  { %12 = vsyncpa [#allocation13], 0 }
   0x3   :  { %13 = vsyncpa [#allocation8], 0  ;;  %s1212_s18 = smov [#allocation9]   ;;  %s1072_s22 = scalar_lea.hbm %s1511_s1, 512 }
   0x4   :  { %s29_s19 = sshll.u32 %s1212_s18, 4  ;;  %p1073_p0 = scmp.ne.s32.totalorder %s1511_s1, %s1072_s22  ;;  %s30_s19 = int_to_ptr.vmem [resolvable:$true] %s29_s19 }
   0x5   :  { %p1076_p1 = scmp.lt.u32.totalorder %s1072_s22, %s1511_s1 }
   0x7   :  { %p1078_p2 = pnand %p1076_p1, %p1073_p0 }
   0x9   :  { %1081 = shalt.err (!%p1078_p2)
}
   0xa   :  { %s1082_s27 = scalar_lea.vmem %s30_s19, 512  ;;  %p1087_p4 = scmp.lt.s32.totalorder %s30_s19, %s30_s19 }
   0xb   :  { %p1083_p3 = scmp.ne.s32.totalorder %s30_s19, %s1082_s27  ;;  %p1088_p5 = scmp.lt.s32.totalorder %s1082_s27, %s1082_s27 }
   0xd   :  { %p1089_p6 = por %p1088_p5, %p1087_p4 }
   0xf   :  { %p1090_p7 = pnand %p1089_p6, %p1083_p3 }
  0x11   :  { %1093 = shalt.err (!%p1090_p7)
}
  0x12   :  { %s1213_s28 = smov 64   ;;  %s1214_s29 = smov 4  }
  0x13   :  { %35 = dma.hbm_to_vmem [thread:$0]  %s1511_s1, 512, %s30_s19, [#allocation10], %s1213_s28, %s1213_s28, %s1214_s29  }
  0x14   :  { %s1215_s7 = smov [#allocation12]   ;;  %s1216_s9 = smov [#allocation6]  }
  0x15   :  { %s53_s8 = sshll.u32 %s1215_s7, 4  ;;  %s20_s10 = sshll.u32 %s1216_s9, 4  ;;  %s54_s8 = int_to_ptr.vmem [resolvable:$true] %s53_s8  ;;  %s21_s10 = int_to_ptr.vmem [resolvable:$true] %s20_s10 }
  0x16   :  { %s1094_s13 = scalar_lea.hbm %s1513_s3, 1024 }
  0x17   :  { %p1095_p8 = scmp.ne.s32.totalorder %s1513_s3, %s1094_s13  ;;  %p1098_p9 = scmp.lt.u32.totalorder %s1094_s13, %s1513_s3 }
  0x19   :  { %p1100_p10 = pnand %p1098_p9, %p1095_p8 }
  0x1b   :  { %1103 = shalt.err (!%p1100_p10)
}
  0x1c   :  { %s1104_s1 = scalar_lea.vmem %s54_s8, 1024  ;;  %p1109_p12 = scmp.lt.s32.totalorder %s54_s8, %s54_s8 }
  0x1d   :  { %p1105_p11 = scmp.ne.s32.totalorder %s54_s8, %s1104_s1  ;;  %p1110_p13 = scmp.lt.s32.totalorder %s1104_s1, %s1104_s1 }
  0x1f   :  { %p1111_p0 = por %p1110_p13, %p1109_p12 }
  0x21   :  { %p1112_p1 = pnand %p1111_p0, %p1105_p11 }
  0x23   :  { %1115 = shalt.err (!%p1112_p1)
}
  0x24   :  { %59 = dma.hbm_to_vmem [thread:$0]  %s1513_s3, 1024, %s54_s8, [#allocation13], %s1213_s28, %s1213_s28, %s1214_s29  }
  0x25   :  { %s1116_s22 = scalar_lea.hbm %s1510_s0, 128 }
  0x26   :  { %p1117_p2 = scmp.ne.s32.totalorder %s1510_s0, %s1116_s22  ;;  %p1120_p3 = scmp.lt.u32.totalorder %s1116_s22, %s1510_s0 }
  0x28   :  { %p1122_p4 = pnand %p1120_p3, %p1117_p2 }
  0x2a   :  { %1125 = shalt.err (!%p1122_p4)
}
  0x2b   :  { %s1126_s27 = scalar_lea.vmem %s21_s10, 128  ;;  %p1131_p6 = scmp.lt.s32.totalorder %s21_s10, %s21_s10 }
  0x2c   :  { %p1127_p5 = scmp.ne.s32.totalorder %s21_s10, %s1126_s27  ;;  %p1132_p7 = scmp.lt.s32.totalorder %s1126_s27, %s1126_s27 }
  0x2e   :  { %p1133_p8 = por %p1132_p7, %p1131_p6 }
  0x30   :  { %p1134_p9 = pnand %p1133_p8, %p1127_p5 }
  0x32   :  { %1137 = shalt.err (!%p1134_p9)
}
  0x33   :  { %23 = dma.hbm_to_vmem [thread:$0]  %s1510_s0, 128, %s21_s10, [#allocation7]  }
  0x34   :  { %s1217_s6 = smov [#allocation11]   ;;  %s1218_s8 = smov [#allocation14]  }
  0x35   :  { %s41_s7 = sshll.u32 %s1217_s6, 4  ;;  %s65_s9 = sshll.u32 %s1218_s8, 4  ;;  %s42_s7 = int_to_ptr.vmem [resolvable:$true] %s41_s7  ;;  %s66_s9 = int_to_ptr.vmem [resolvable:$true] %s65_s9 }
  0x36   :  { %s1138_s13 = scalar_lea.hbm %s1512_s2, 1024 }
  0x37   :  { %p1139_p10 = scmp.ne.s32.totalorder %s1512_s2, %s1138_s13  ;;  %p1142_p11 = scmp.lt.u32.totalorder %s1138_s13, %s1512_s2 }
  0x39   :  { %p1144_p12 = pnand %p1142_p11, %p1139_p10 }
  0x3b   :  { %1147 = shalt.err (!%p1144_p12)
}
  0x3c   :  { %s1148_s0 = scalar_lea.vmem %s42_s7, 1024  ;;  %p1153_p0 = scmp.lt.s32.totalorder %s42_s7, %s42_s7 }
  0x3d   :  { %p1149_p13 = scmp.ne.s32.totalorder %s42_s7, %s1148_s0  ;;  %p1154_p1 = scmp.lt.s32.totalorder %s1148_s0, %s1148_s0 }
  0x3f   :  { %p1155_p2 = por %p1154_p1, %p1153_p0 }
  0x41   :  { %p1156_p3 = pnand %p1155_p2, %p1149_p13 }
  0x43   :  { %1159 = shalt.err (!%p1156_p3)
}
  0x44   :  { %47 = dma.hbm_to_vmem [thread:$0]  %s1512_s2, 1024, %s42_s7, [#allocation10], %s1213_s28, %s1213_s28, %s1214_s29  }
  0x45   :  { %s1160_s20 = scalar_lea.hbm %s1514_s4, 1024 }
  0x46   :  { %p1161_p4 = scmp.ne.s32.totalorder %s1514_s4, %s1160_s20  ;;  %p1164_p5 = scmp.lt.u32.totalorder %s1160_s20, %s1514_s4 }
  0x48   :  { %p1166_p6 = pnand %p1164_p5, %p1161_p4 }
  0x4a   :  { %1169 = shalt.err (!%p1166_p6)
}
  0x4b   :  { %s1170_s25 = scalar_lea.vmem %s66_s9, 1024  ;;  %p1175_p8 = scmp.lt.s32.totalorder %s66_s9, %s66_s9 }
  0x4c   :  { %p1171_p7 = scmp.ne.s32.totalorder %s66_s9, %s1170_s25  ;;  %p1176_p9 = scmp.lt.s32.totalorder %s1170_s25, %s1170_s25 }
  0x4e   :  { %p1177_p10 = por %p1176_p9, %p1175_p8 }
  0x50   :  { %p1178_p11 = pnand %p1177_p10, %p1171_p7 }
  0x52   :  { %1181 = shalt.err (!%p1178_p11)
}
  0x53   :  { %71 = dma.hbm_to_vmem [thread:$0]  %s1514_s4, 1024, %s66_s9, [#allocation13], %s1213_s28, %s1213_s28, %s1214_s29  }
  0x54   :  { %1204 = dma.done.wait [#allocation7], 128  }
  0x55   :  { %1205 = vsyncadd [#allocation7], 4294967168 }
  0x56   :  { %1206 = dma.done.wait [#allocation10], 1536  }
  0x57   :  { %1207 = vsyncadd [#allocation10], 4294965760 }
  0x58   :  { %1208 = dma.done.wait [#allocation13], 2048  }
  0x59   :  { %1209 = vsyncadd [#allocation13], 4294965248  ;;  %v1219_v0 = vmov 0.0   ;;  %vm1220_vm0 = vmmov 0   ;;  %v1028_v1 = vld [vmem:[#allocation11] sm:$0xff]   ;;  %v1029_v2 = vld [vmem:[#allocation11 + $0x8] sm:$0xff]   ;;  %v217_v13 = vlaneseq }
  0x5a   :  { %949 = vmatprep.subr.bf16.mxu0 %v1219_v0  ;;  %965 = vmatprep.mubr.msk.bf16.mxu0 %vm1220_vm0, %v1219_v0  ;;  %v1030_v3 = vld [vmem:[#allocation11 + $0x10] sm:$0xff]   ;;  %v1031_v4 = vld [vmem:[#allocation11 + $0x18] sm:$0xff]   ;;  %v1032_v5 = vld [vmem:[#allocation11 + $0x20] sm:$0xff]   ;;  %v1221_v11 = vmov 1966171168   ;;  %vm199_vm1 = vcmask 7168  }
  0x5b   :  { %969 = vmatprep.subr.bf16.mxu1 %v1219_v0  ;;  %985 = vmatprep.mubr.msk.bf16.mxu1 %vm1220_vm0, %v1219_v0  ;;  %v1033_v6 = vld [vmem:[#allocation11 + $0x28] sm:$0xff]   ;;  %v1034_v7 = vld [vmem:[#allocation11 + $0x30] sm:$0xff]   ;;  %v1035_v8 = vld [vmem:[#allocation11 + $0x38] sm:$0xff]   ;;  %v215_v12 = vunpack.c.l.s4 %v1221_v11  ;;  %v1343_v15 = vshrl.u32 %v217_v13, 7  ;;  %v1222_v63 = vmov -inf   ;;  %201 = vst.msk [vmem:[#allocation4] sm:$0xff] %vm199_vm1, %v1219_v0 }
  0x5c   :  { %950 = vmatpush3.bf16.msra.mxu0 %v1028_v1  ;;  %v92_v9 = vld [vmem:[#allocation6] sm:$0xff]  ;;  %v1346_v18 = vld [vmem:[#allocation9] sm:$0xff]   ;;  %v1351_v23 = vld [vmem:[#allocation9 + $0x8] sm:$0xff]   ;;  %200 = vst.msk [vmem:[#allocation3] sm:$0xff] %vm199_vm1, %v1222_v63  ;;  %v344_v1 = vand.u32 127, %v217_v13  ;;  %vm377_vm2 = vcmask 1041409  }
  0x5d   :  { %951 = vmatprep.subr.bf16.mxu0 %v1219_v0  ;;  %v1340_v10 = vpack.c.bf16 %v92_v9, %v92_v9  ;;  %v216_v14 = vunpack.c.0.s8 %v215_v12  ;;  %v1349_v22 = vsub.s32 0, %v1343_v15  ;;  %v905_v29 = vunpack.c.l.bf16 %v1346_v18  ;;  %v1361_v41 = vld [vmem:[#allocation9 + $0x10] sm:$0xff]   ;;  %v1371_v50 = vld [vmem:[#allocation9 + $0x18] sm:$0xff]   ;;  %s1224_s4 = smov [#allocation15]  }
  0x5e   :  { %v909_v30 = vunpack.c.l.bf16 %v1351_v23  ;;  %v906_v35 = vunpack.c.h.bf16 %v1346_v18  ;;  %v910_v43 = vunpack.c.h.bf16 %v1351_v23  ;;  %v913_v47 = vunpack.c.l.bf16 %v1361_v41  ;;  %s868_s28 = sshll.u32 %s1224_s4, 4  ;;  %s869_s28 = int_to_ptr.vmem [resolvable:$true] %s868_s28 }
  0x5f   :  { %v219_v16 = vsub.s32 %v216_v14, %v1343_v15  ;;  %v914_v52 = vunpack.c.h.bf16 %v1361_v41  ;;  %v917_v56 = vunpack.c.l.bf16 %v1371_v50  ;;  %v918_v59 = vunpack.c.h.bf16 %v1371_v50  ;;  %v1045_v50 = vld [vmem:[#allocation14 + $0x8] sm:$0xff]   ;;  %s1182_s29 = scalar_lea.vmem %s869_s28, 128  ;;  %p1187_p13 = scmp.lt.s32.totalorder %s869_s28, %s869_s28 }
  0x60   :  { %952 = vmatpush3.bf16.msra.mxu0 %v1029_v2  ;;  %vm379_vm3 = vcmask 1042434   ;;  %vm381_vm4 = vcmask 1043459   ;;  %vm383_vm5 = vcmask 1044484   ;;  %vm385_vm6 = vcmask 1045509   ;;  %p1183_p12 = scmp.ne.s32.totalorder %s869_s28, %s1182_s29  ;;  %p1188_p0 = scmp.lt.s32.totalorder %s1182_s29, %s1182_s29 }
  0x61   :  { %953 = vmatprep.subr.bf16.mxu0 %v1219_v0  ;;  %vm387_vm7 = vcmask 1046534   ;;  %vm389_vm8 = vcmask 1047559   ;;  %vm392_vm9 = vcmask 64512  }
  0x62   :  { %p1189_p1 = por %p1188_p0, %p1187_p13 }
  0x64   :  { %954 = vmatpush3.bf16.msra.mxu0 %v1030_v3  ;;  %v1393_v3 = vsub.s32 %v344_v1, %v1343_v15  ;;  %p1190_p2 = pnand %p1189_p1, %p1183_p12 }
  0x65   :  { %955 = vmatprep.subr.bf16.mxu0 %v1219_v0 }
  0x68   :  { %956 = vmatpush3.bf16.msra.mxu0 %v1031_v4 }
  0x69   :  { %957 = vmatprep.subr.bf16.mxu0 %v1219_v0 }
  0x6c   :  { %958 = vmatpush3.bf16.msra.mxu0 %v1032_v5 }
  0x6d   :  { %959 = vmatprep.subr.bf16.mxu0 %v1219_v0 }
  0x70   :  { %960 = vmatpush3.bf16.msra.mxu0 %v1033_v6 }
  0x71   :  { %961 = vmatprep.subr.bf16.mxu0 %v1219_v0 }
  0x74   :  { %962 = vmatpush3.bf16.msra.mxu0 %v1034_v7 }
  0x75   :  { %963 = vmatprep.subr.bf16.mxu0 %v1219_v0 }
  0x78   :  { %964 = vmatpush3.bf16.msra.mxu0 %v1035_v8 }
  0x7b   :  { %966 = vmatmul.mubr.bf16.vlgmr.msra.gmra.mrb[0].mxu0 %v1340_v10 }
 0x14e   :  { %v192_v17 = vpop.f32.mrb[0].mxu0 }
 0x14f   :  { %v213_v19 = vcombine.high %v192_v17, %v192_v17  ;;  %v220_v20 = vrot.slane %v192_v17, %v219_v16  ;;  %v967_v21 = vpop.f32.mrb[1].mxu0 }
 0x150   :  { %v195_v24 = vpop.f32.mrb[2].mxu0 }
 0x151   :  { %v227_v25 = vrot.slane %v213_v19, %v219_v16  ;;  %v228_v26 = vcombine.high %v220_v20, %v220_v20  ;;  %v236_v27 = vrot.slane %v220_v20, %v219_v16  ;;  %v968_v28 = vpop.f32.mrb[3].mxu0 }
 0x153   :  { %v229_v31 = vcombine.high %v227_v25, %v227_v25  ;;  %v273_v32 = vrot.slane %v236_v27, %v1349_v22  ;;  %v258_v33 = vcombine.high %v236_v27, %v236_v27  ;;  %v250_v34 = vrot.slane %v228_v26, %v219_v16 }
 0x154   :  { %v243_v36 = vrot.slane %v227_v25, %v219_v16 }
 0x155   :  { %v310_v37 = vmul.f32 %v905_v29, %v273_v32  ;;  %v281_v38 = vrot.slane %v258_v33, %v1349_v22  ;;  %v277_v39 = vrot.slane %v250_v34, %v1349_v22  ;;  %v260_v40 = vcombine.high %v250_v34, %v250_v34 }
 0x156   :  { %v257_v45 = vrot.slane %v229_v31, %v219_v16  ;;  %v289_v48 = vrot.slane %v243_v36, %v1349_v22  ;;  %v259_v49 = vcombine.high %v243_v36, %v243_v36  ;;  %v1223_v34 = vmov 0   ;;  %v1417_v36 = vld [vmem:[#allocation3] sm:$0xff] }
 0x157   :  { %318 = vadd.xlane.f32.xlu0 %v310_v37  ;;  %v312_v42 = vmul.f32 %v909_v30, %v281_v38  ;;  %v285_v44 = vrot.slane %v260_v40, %v1349_v22  ;;  %v311_v46 = vmul.f32 %v906_v35, %v277_v39  ;;  %1026 = vset.pattern.permute.xlu1 %v1223_v34  ;;  %v410_v40 = vsub.s32 1, %v1343_v15 }
 0x158   :  { %v293_v53 = vrot.slane %v257_v45, %v1349_v22  ;;  %v261_v54 = vcombine.high %v257_v45, %v257_v45  ;;  %v314_v55 = vmul.f32 %v913_v47, %v289_v48  ;;  %v297_v57 = vrot.slane %v259_v49, %v1349_v22  ;;  %1027 = vset.pattern.permute.xlu0 %v1223_v34 }
 0x159   :  { %322 = vadd.xlane.f32.xlu1 %v312_v42  ;;  %v313_v51 = vmul.f32 %v910_v43, %v285_v44  ;;  %v414_v42 = vsub.s32 2, %v1343_v15  ;;  %v418_v44 = vsub.s32 3, %v1343_v15 }
 0x15a   :  { %v315_v58 = vmul.f32 %v914_v52, %v293_v53  ;;  %v301_v60 = vrot.slane %v261_v54, %v1349_v22  ;;  %v316_v61 = vmul.f32 %v917_v56, %v297_v57  ;;  %v422_v54 = vsub.s32 4, %v1343_v15 }
 0x15b   :  { %320 = vadd.xlane.f32.xlu0 %v311_v46 }
 0x15c   :  { %v317_v62 = vmul.f32 %v918_v59, %v301_v60 }
 0x15d   :  { %324 = vadd.xlane.f32.xlu1 %v313_v51 }
 0x15f   :  { %326 = vadd.xlane.f32.xlu0 %v314_v55 }
 0x161   :  { %328 = vadd.xlane.f32.xlu1 %v315_v58 }
 0x163   :  { %330 = vadd.xlane.f32.xlu0 %v316_v61  ;;  %v426_v61 = vsub.s32 5, %v1343_v15 }
 0x165   :  { %332 = vadd.xlane.f32.xlu1 %v317_v62 }
 0x1e4   :  { %v319_v2 = vpop.xlane.xlu0 %318 }
 0x1e5   :  { %v348_v6 = vrot.slane %v319_v2, %v1393_v3 }
 0x1e6   :  { %v323_v4 = vpop.xlane.xlu1 %322 }
 0x1e7   :  { %v356_v8 = vrot.slane %v323_v4, %v1393_v3 }
 0x1e8   :  { %v321_v5 = vpop.xlane.xlu0 %320 }
 0x1e9   :  { %v352_v7 = vrot.slane %v321_v5, %v1393_v3 }
 0x1ea   :  { %v325_v9 = vpop.xlane.xlu1 %324 }
 0x1eb   :  { %v378_v11 = vsel %vm377_vm2, %v352_v7, %v348_v6  ;;  %v360_v12 = vrot.slane %v325_v9, %v1393_v3  ;;  %v430_v6 = vsub.s32 6, %v1343_v15 }
 0x1ec   :  { %v380_v13 = vsel %vm379_vm3, %v356_v8, %v378_v11  ;;  %v327_v14 = vpop.xlane.xlu0 %326 }
 0x1ed   :  { %v382_v16 = vsel %vm381_vm4, %v360_v12, %v380_v13  ;;  %v364_v17 = vrot.slane %v327_v14, %v1393_v3 }
 0x1ee   :  { %v329_v19 = vpop.xlane.xlu1 %328 }
 0x1ef   :  { %v384_v20 = vsel %vm383_vm5, %v364_v17, %v382_v16  ;;  %v368_v21 = vrot.slane %v329_v19, %v1393_v3 }
 0x1f0   :  { %v1405_v24 = vpop.xlane.xlu0 %330 }
 0x1f1   :  { %v372_v25 = vrot.slane %v1405_v24, %v1393_v3  ;;  %v386_v26 = vsel %vm385_vm6, %v368_v21, %v384_v20 }
 0x1f2   :  { %v1410_v27 = vpop.xlane.xlu1 %332 }
 0x1f3   :  { %v376_v28 = vrot.slane %v1410_v27, %v1393_v3  ;;  %v388_v31 = vsel %vm387_vm7, %v372_v25, %v386_v26 }
 0x1f5   :  { %v390_v32 = vsel %vm389_vm8, %v376_v28, %v388_v31 }
 0x1f6   :  { %v393_v33 = vsel %vm392_vm9, %v390_v32, -inf }
 0x1f7   :  { %394 = vmax.xlane.f32.xlu0 %v393_v33 }
 0x284   :  { %v395_v37 = vpop.xlane.xlu0 %394 }
 0x285   :  { %v1420_v38 = vmax.f32 %v1417_v36, %v395_v37 }
 0x287   :  { %v397_v39 = vsub.f32 %v1417_v36, %v1420_v38  ;;  %637 = vst.msk [vmem:[#allocation3] sm:$0xff] %vm199_vm1, %v1420_v38  ;;  %402 = vperm.xlu1 %1026, %v1420_v38  }
 0x306   :  { %v403_v45 = vpop.permute.xlu1 %402 }
 0x307   :  { %v407_v46 = vrot.slane %v403_v45, %v1349_v22  ;;  %v411_v48 = vrot.slane %v403_v45, %v410_v40  ;;  %v415_v49 = vrot.slane %v403_v45, %v414_v42  ;;  %v419_v55 = vrot.slane %v403_v45, %v418_v44 }
 0x308   :  { %v423_v62 = vrot.slane %v403_v45, %v422_v54  ;;  %v427_v22 = vrot.slane %v403_v45, %v426_v61  ;;  %v431_v8 = vrot.slane %v403_v45, %v430_v6 }
 0x309   :  { %v444_v51 = vsub.f32 %v319_v2, %v407_v46  ;;  %v445_v53 = vsub.f32 %v321_v5, %v411_v48  ;;  %v446_v57 = vsub.f32 %v323_v4, %v415_v49  ;;  %v447_v63 = vsub.f32 %v325_v9, %v419_v55 }
 0x30a   :  { %v448_v7 = vsub.f32 %v327_v14, %v423_v62  ;;  %v434_v5 = vsub.s32 7, %v1343_v15  ;;  %v449_v11 = vsub.f32 %v329_v19, %v427_v22  ;;  %v450_v9 = vsub.f32 %v1405_v24, %v431_v8 }
 0x30b   :  { %v452_v58 = vmul.f32 1.442695, %v444_v51  ;;  %v454_v60 = vmul.f32 1.442695, %v445_v53  ;;  %v456_v1 = vmul.f32 1.442695, %v446_v57 }
 0x30c   :  { %v458_v2 = vmul.f32 1.442695, %v447_v63  ;;  %v460_v4 = vmul.f32 1.442695, %v448_v7  ;;  %v435_v16 = vrot.slane %v403_v45, %v434_v5  ;;  %v462_v17 = vmul.f32 1.442695, %v449_v11 }
 0x30d   :  { %1052 = vpow2.f32 %v452_v58  ;;  %v464_v21 = vmul.f32 1.442695, %v450_v9 }
 0x30e   :  { %1054 = vpow2.f32 %v454_v60  ;;  %v451_v14 = vsub.f32 %v1410_v27, %v435_v16 }
 0x30f   :  { %1056 = vpow2.f32 %v456_v1 }
 0x310   :  { %1058 = vpow2.f32 %v458_v2  ;;  %v466_v19 = vmul.f32 1.442695, %v451_v14 }
 0x311   :  { %1060 = vpow2.f32 %v460_v4 }
 0x312   :  { %1062 = vpow2.f32 %v462_v17 }
 0x313   :  { %1064 = vpow2.f32 %v464_v21 }
 0x314   :  { %1066 = vpow2.f32 %v466_v19 }
 0x317   :  { %v1053_v12 = vpop.eup %1052 }
 0x318   :  { %v1055_v13 = vpop.eup %1054  ;;  %479 = vperm.xlu0 %1027, %v1053_v12  }
 0x319   :  { %482 = vperm.xlu1 %1026, %v1055_v13   ;;  %v1057_v20 = vpop.eup %1056 }
 0x31a   :  { %v1059_v15 = vpop.eup %1058 }
 0x31b   :  { %v1061_v25 = vpop.eup %1060 }
 0x31c   :  { %v1063_v26 = vpop.eup %1062 }
 0x31d   :  { %485 = vperm.xlu1 %1026, %v1057_v20   ;;  %v1065_v28 = vpop.eup %1064 }
 0x31e   :  { %v1067_v24 = vpop.eup %1066 }
 0x321   :  { %488 = vperm.xlu1 %1026, %v1059_v15  }
 0x325   :  { %491 = vperm.xlu1 %1026, %v1061_v25  }
 0x329   :  { %494 = vperm.xlu1 %1026, %v1063_v26  }
 0x32d   :  { %497 = vperm.xlu1 %1026, %v1065_v28  }
 0x331   :  { %500 = vperm.xlu1 %1026, %v1067_v24  }
 0x397   :  { %v480_v31 = vpop.permute.xlu0 %479 }
 0x398   :  { %v483_v32 = vpop.permute.xlu1 %482  ;;  %v556_v27 = vmul.f32 %v905_v29, %v480_v31  ;;  %v505_v2 = vrot.slane %v480_v31, %v1393_v3 }
 0x399   :  { %v557_v33 = vmul.f32 %v906_v35, %v483_v32  ;;  %v509_v7 = vrot.slane %v483_v32, %v1393_v3 }
 0x39a   :  { %v564_v34 = vrot.slane %v556_v27, 4 }
 0x39b   :  { %v570_v37 = vrot.slane %v557_v33, 4  ;;  %v534_v20 = vsel %vm377_vm2, %v509_v7, %v505_v2 }
 0x39c   :  { %v565_v40 = vadd.f32 %v564_v34, %v556_v27  ;;  %v486_v42 = vpop.permute.xlu1 %485 }
 0x39d   :  { %v571_v44 = vadd.f32 %v570_v37, %v557_v33  ;;  %v558_v45 = vmul.f32 %v909_v30, %v486_v42  ;;  %v513_v12 = vrot.slane %v486_v42, %v1393_v3 }
 0x39e   :  { %v566_v46 = vrot.slane %v565_v40, 2 }
 0x39f   :  { %v572_v48 = vrot.slane %v571_v44, 2  ;;  %v576_v49 = vrot.slane %v558_v45, 4  ;;  %v535_v26 = vsel %vm379_vm3, %v513_v12, %v534_v20 }
 0x3a0   :  { %v567_v51 = vadd.f32 %v566_v46, %v565_v40  ;;  %v489_v53 = vpop.permute.xlu1 %488 }
 0x3a1   :  { %v573_v54 = vadd.f32 %v572_v48, %v571_v44  ;;  %v577_v55 = vadd.f32 %v576_v49, %v558_v45  ;;  %v559_v29 = vmul.f32 %v910_v43, %v489_v53  ;;  %v517_v16 = vrot.slane %v489_v53, %v1393_v3 }
 0x3a2   :  { %v568_v18 = vrot.slane %v567_v51, 1 }
 0x3a3   :  { %v574_v35 = vrot.slane %v573_v54, 1  ;;  %v578_v57 = vrot.slane %v577_v55, 2  ;;  %v582_v58 = vrot.slane %v559_v29, 4  ;;  %v536_v31 = vsel %vm381_vm4, %v517_v16, %v535_v26  ;;  %v1049_v26 = vld [vmem:[#allocation14 + $0x28] sm:$0xff]  }
 0x3a4   :  { %v492_v60 = vpop.permute.xlu1 %491  ;;  %v569_v1 = vadd.f32 %v568_v18, %v567_v51 }
 0x3a5   :  { %v579_v61 = vadd.f32 %v578_v57, %v577_v55  ;;  %v583_v62 = vadd.f32 %v582_v58, %v559_v29  ;;  %v575_v63 = vadd.f32 %v574_v35, %v573_v54  ;;  %v560_v30 = vmul.f32 %v913_v47, %v492_v60 }
 0x3a6   :  { %v521_v14 = vrot.slane %v492_v60, %v1393_v3  ;;  %v1036_v60 = vld [vmem:[#allocation12] sm:$0xff]  }
 0x3a7   :  { %v580_v6 = vrot.slane %v579_v61, 1  ;;  %v584_v22 = vrot.slane %v583_v62, 2  ;;  %v588_v23 = vrot.slane %v560_v30, 4  ;;  %v627_v4 = vsel %vm377_vm2, %v575_v63, %v569_v1  ;;  %970 = vmatpush3.bf16.msra.mxu1 %v1036_v60  ;;  %v1039_v63 = vld [vmem:[#allocation12 + $0x18] sm:$0xff]   ;;  %v1040_v1 = vld [vmem:[#allocation12 + $0x20] sm:$0xff]  }
 0x3a8   :  { %v495_v43 = vpop.permute.xlu1 %494  ;;  %v537_v34 = vsel %vm383_vm5, %v521_v14, %v536_v31  ;;  %971 = vmatprep.subr.bf16.mxu1 %v1219_v0 }
 0x3a9   :  { %v581_v5 = vadd.f32 %v580_v6, %v579_v61  ;;  %v585_v8 = vadd.f32 %v584_v22, %v583_v62  ;;  %v561_v11 = vmul.f32 %v914_v52, %v495_v43  ;;  %v589_v13 = vadd.f32 %v588_v23, %v560_v30  ;;  %v1037_v61 = vld [vmem:[#allocation12 + $0x8] sm:$0xff]   ;;  %v1038_v62 = vld [vmem:[#allocation12 + $0x10] sm:$0xff]  }
 0x3aa   :  { %v525_v41 = vrot.slane %v495_v43, %v1393_v3  ;;  %v398_v30 = vmul.f32 1.442695, %v397_v39  ;;  %v468_v22 = vld [vmem:[#allocation4] sm:$0xff] }
 0x3ab   :  { %v628_v47 = vsel %vm379_vm3, %v581_v5, %v627_v4  ;;  %v586_v9 = vrot.slane %v585_v8, 1  ;;  %v594_v17 = vrot.slane %v561_v11, 4  ;;  %v590_v21 = vrot.slane %v589_v13, 2  ;;  %972 = vmatpush3.bf16.msra.mxu1 %v1037_v61  ;;  %v1041_v5 = vld [vmem:[#allocation12 + $0x28] sm:$0xff]  }
 0x3ac   :  { %v498_v15 = vpop.permute.xlu1 %497  ;;  %973 = vmatprep.subr.bf16.mxu1 %v1219_v0  ;;  %1068 = vpow2.f32 %v398_v30 }
 0x3ad   :  { %v587_v19 = vadd.f32 %v586_v9, %v585_v8  ;;  %v595_v52 = vadd.f32 %v594_v17, %v561_v11  ;;  %v562_v25 = vmul.f32 %v917_v56, %v498_v15  ;;  %v591_v28 = vadd.f32 %v590_v21, %v589_v13  ;;  %v1042_v8 = vld [vmem:[#allocation12 + $0x30] sm:$0xff]   ;;  %v1043_v11 = vld [vmem:[#allocation12 + $0x38] sm:$0xff]  }
 0x3ae   :  { %v529_v24 = vrot.slane %v498_v15, %v1393_v3  ;;  %v538_v56 = vsel %vm385_vm6, %v525_v41, %v537_v34 }
 0x3af   :  { %v596_v32 = vrot.slane %v595_v52, 2  ;;  %v600_v27 = vrot.slane %v562_v25, 4  ;;  %v629_v33 = vsel %vm381_vm4, %v587_v19, %v628_v47  ;;  %v592_v37 = vrot.slane %v591_v28, 1  ;;  %974 = vmatpush3.bf16.msra.mxu1 %v1038_v62  ;;  %v1044_v19 = vld [vmem:[#allocation14] sm:$0xff]  }
 0x3b0   :  { %v501_v40 = vpop.permute.xlu1 %500  ;;  %v539_v48 = vsel %vm387_vm7, %v529_v24, %v538_v56  ;;  %975 = vmatprep.subr.bf16.mxu1 %v1219_v0  ;;  %v1051_v24 = vld [vmem:[#allocation14 + $0x38] sm:$0xff]  }
 0x3b1   :  { %v597_v42 = vadd.f32 %v596_v32, %v595_v52  ;;  %v601_v44 = vadd.f32 %v600_v27, %v562_v25  ;;  %v533_v45 = vrot.slane %v501_v40, %v1393_v3  ;;  %v593_v46 = vadd.f32 %v592_v37, %v591_v28  ;;  %v1047_v52 = vld [vmem:[#allocation14 + $0x18] sm:$0xff]   ;;  %v1048_v25 = vld [vmem:[#allocation14 + $0x20] sm:$0xff]   ;;  %v1050_v28 = vld [vmem:[#allocation14 + $0x30] sm:$0xff]  }
 0x3b2   :  { %v563_v36 = vmul.f32 %v918_v59, %v501_v40  ;;  %v1046_v59 = vld [vmem:[#allocation14 + $0x10] sm:$0xff]  }
 0x3b3   :  { %v598_v49 = vrot.slane %v597_v42, 1  ;;  %v602_v51 = vrot.slane %v601_v44, 2  ;;  %v540_v53 = vsel %vm389_vm8, %v533_v45, %v539_v48  ;;  %v630_v55 = vsel %vm383_vm5, %v593_v46, %v629_v33  ;;  %976 = vmatpush3.bf16.msra.mxu1 %v1039_v63 }
 0x3b4   :  { %v542_v54 = vsel %vm392_vm9, %v540_v53, 0.0  ;;  %977 = vmatprep.subr.bf16.mxu1 %v1219_v0  ;;  %v606_v38 = vrot.slane %v563_v36, 4 }
 0x3b5   :  { %v599_v29 = vadd.f32 %v598_v49, %v597_v42  ;;  %v603_v18 = vadd.f32 %v602_v51, %v601_v44  ;;  %543 = vadd.xlane.f32.xlu1 %v542_v54 }
 0x3b6   :  { %v1069_v6 = vpop.eup %1068  ;;  %v607_v39 = vadd.f32 %v606_v38, %v563_v36 }
 0x3b7   :  { %v604_v35 = vrot.slane %v603_v18, 1  ;;  %v631_v57 = vsel %vm385_vm6, %v599_v29, %v630_v55  ;;  %978 = vmatpush3.bf16.msra.mxu1 %v1040_v1  ;;  %v469_v7 = vmul.f32 %v1069_v6, %v468_v22 }
 0x3b8   :  { %979 = vmatprep.subr.bf16.mxu1 %v1219_v0  ;;  %v608_v4 = vrot.slane %v607_v39, 2 }
 0x3b9   :  { %v605_v3 = vadd.f32 %v604_v35, %v603_v18 }
 0x3ba   :  { %v609_v12 = vadd.f32 %v608_v4, %v607_v39 }
 0x3bb   :  { %v632_v58 = vsel %vm387_vm7, %v605_v3, %v631_v57  ;;  %980 = vmatpush3.bf16.msra.mxu1 %v1041_v5 }
 0x3bc   :  { %981 = vmatprep.subr.bf16.mxu1 %v1219_v0  ;;  %v610_v47 = vrot.slane %v609_v12, 1 }
 0x3be   :  { %v611_v9 = vadd.f32 %v610_v47, %v609_v12 }
 0x3bf   :  { %982 = vmatpush3.bf16.msra.mxu1 %v1042_v8 }
 0x3c0   :  { %983 = vmatprep.subr.bf16.mxu1 %v1219_v0  ;;  %v633_v20 = vsel %vm389_vm8, %v611_v9, %v632_v58 }
 0x3c3   :  { %984 = vmatpush3.bf16.msra.mxu1 %v1043_v11 }
 0x3c4   :  { %989 = vmatprep.subr.bf16.mxu1 %v1219_v0 }
 0x442   :  { %v544_v2 = vpop.xlane.xlu1 %543 }
 0x443   :  { %v545_v23 = vadd.f32 %v544_v2, %v469_v7 }
 0x445   :  { %547 = vst.msk [vmem:[#allocation4] sm:$0xff] %vm199_vm1, %v545_v23 }
 0x44c   :  { %v642_v43 = vld [vmem:[#allocation4] sm:$0xff] }
 0x44d   :  { %645 = vperm.xlu0 %1027, %v642_v43  }
 0x451   :  { %615 = vperm.xlu0 %1027, %v1069_v6  }
 0x4cc   :  { %v646_v13 = vpop.permute.xlu0 %645 }
 0x4cd   :  { %1070 = vrcp.f32 %v646_v13 }
 0x4d0   :  { %v616_v16 = vpop.permute.xlu0 %615 }
 0x4d1   :  { %v618_v17 = vmul.f32 0.0, %v616_v16 }
 0x4d3   :  { %v635_v14 = vadd.f32 %v633_v20, %v618_v17 }
 0x4d7   :  { %v1071_v21 = vpop.eup %1070 }
 0x4d8   :  { %v649_v15 = vmul.f32 %v1071_v21, %v635_v14 }
 0x4da   :  { %v668_v41 = vpack.c.bf16 %v649_v15, %v649_v15 }
 0x4dc   :  { %986 = vmatmul.mubr.bf16.vlgmr.msra.gmra.mrb[0].mxu1 %v668_v41 }
 0x4dd   :  { %990 = vmatpush3.bf16.msra.mxu1 %v1044_v19  ;;  %1005 = vmatprep.mubr.msk.bf16.mxu1 %vm1220_vm0, %v1219_v0 }
 0x4de   :  { %991 = vmatprep.subr.bf16.mxu1 %v1219_v0 }
 0x4e1   :  { %992 = vmatpush3.bf16.msra.mxu1 %v1045_v50 }
 0x4e2   :  { %993 = vmatprep.subr.bf16.mxu1 %v1219_v0 }
 0x4e5   :  { %994 = vmatpush3.bf16.msra.mxu1 %v1046_v59 }
 0x4e6   :  { %995 = vmatprep.subr.bf16.mxu1 %v1219_v0 }
 0x4e9   :  { %996 = vmatpush3.bf16.msra.mxu1 %v1047_v52 }
 0x4ea   :  { %997 = vmatprep.subr.bf16.mxu1 %v1219_v0 }
 0x4ed   :  { %998 = vmatpush3.bf16.msra.mxu1 %v1048_v25 }
 0x4ee   :  { %999 = vmatprep.subr.bf16.mxu1 %v1219_v0 }
 0x4f1   :  { %1000 = vmatpush3.bf16.msra.mxu1 %v1049_v26 }
 0x4f2   :  { %1001 = vmatprep.subr.bf16.mxu1 %v1219_v0 }
 0x4f5   :  { %1002 = vmatpush3.bf16.msra.mxu1 %v1050_v28 }
 0x4f6   :  { %1003 = vmatprep.subr.bf16.mxu1 %v1219_v0 }
 0x4f9   :  { %1004 = vmatpush3.bf16.msra.mxu1 %v1051_v24 }
 0x4fc   :  { %1006 = vmatmul.mubr.bf16.vlgmr.msra.gmra.mrb[0].mxu1 %v1340_v10 }
 0x5cf   :  { %v855_v31 = vpop.f32.mrb[0].mxu1 }
 0x5d0   :  { %861 = vst [vmem:[#allocation15] sm:$0xff] %v855_v31  ;;  %v1007_v32 = vpop.f32.mrb[1].mxu1 }
 0x5d1   :  { %v858_v27 = vpop.f32.mrb[2].mxu1 }
 0x5d2   :  { %1193 = shalt.err (!%p1190_p2)
}
 0x5d3   :  { %s1194_s30 = scalar_lea.hbm %s1515_s5, 128 }
 0x5d4   :  { %p1195_p3 = scmp.ne.s32.totalorder %s1515_s5, %s1194_s30  ;;  %p1198_p4 = scmp.lt.u32.totalorder %s1194_s30, %s1515_s5 }
 0x5d6   :  { %p1200_p5 = pnand %p1198_p4, %p1195_p3 }
 0x5d8   :  { %1203 = shalt.err (!%p1200_p5)
}
 0x5d9   :  { %871 = dma.vmem_to_hbm [thread:$0]  %s869_s28, 128, %s1515_s5, [#allocation8]   ;;  %v1008_v0 = vpop.f32.mrb[3].mxu1 }
 0x5da   :  { %1210 = dma.done.wait [#allocation8], 128  }
 0x5db   :  { %1211 = vsyncadd [#allocation8], 4294967168 }
 0x5dc   :  { %875 = vsyncpa [#allocation7], 1 }
 0x5dd   :  { %876 = vsyncpa [#allocation10], 1 }
 0x5de   :  { %877 = vsyncpa [#allocation13], 1 }
 0x5df   :  { %878 = vsyncpa [#allocation8], 1 }

</bundles_post_ra>
